<compile_context>
chip_gen: v7x
topology: tpu7x:2x2x1
jax: 0.10.0
libtpu: 0.0.40
codegen_flags: <defaults>
</compile_context>

<pallas_src>
import functools

import jax
import jax.numpy as jnp
from jax.experimental import pallas as pl
from jax.experimental.pallas import tpu as pltpu


def _round_up(x, m):
    return ((x + m - 1) // m) * m


def _sublane(dtype):
    # sublane packing: 8 rows for 4-byte, 16 for 2-byte, 32 for 1-byte dtypes
    return {4: 8, 2: 16, 1: 32}[jnp.dtype(dtype).itemsize]


def _pick_tile(dim_pad, t_max):
    """Largest 128-multiple divisor of dim_pad (itself a 128 multiple) <= t_max."""
    if dim_pad <= t_max:
        return dim_pad
    best = 128
    t = 256
    while t <= t_max:
        if dim_pad % t == 0:
            best = t
        t += 128
    return best


# ----------------------------- kernels --------------------------------------


def _td_linear_kernel_resident_k(x_ref, w_ref, b_ref, o_ref, *, compute_dtype):
    """Single K step (weight K-resident): no scratch, no init/epilogue gates."""
    x = x_ref[...]
    if compute_dtype is not None:
        x = x.astype(compute_dtype)          # bf16 MXU issue, f32 accumulation
    acc = jnp.dot(x, w_ref[...], preferred_element_type=jnp.float32)
    o_ref[...] = (acc + b_ref[...].astype(jnp.float32)).astype(o_ref.dtype)


def _td_linear_kernel_streamed_k(x_ref, w_ref, b_ref, o_ref, acc_ref, *,
                                 compute_dtype):
    """K-streamed matmul: f32 accumulator initialized with the bias."""
    k = pl.program_id(2)

    @pl.when(k == 0)
    def _():
        # Fold the bias into the accumulator init (saves a tm*tn VPU add).
        acc_ref[...] = jnp.broadcast_to(
            b_ref[...].astype(jnp.float32), acc_ref.shape
        )

    x = x_ref[...]
    if compute_dtype is not None:
        x = x.astype(compute_dtype)
    acc_ref[...] += jnp.dot(x, w_ref[...], preferred_element_type=jnp.float32)

    @pl.when(k == pl.num_programs(2) - 1)
    def _():
        o_ref[...] = acc_ref[...].astype(o_ref.dtype)


# ----------------------------- wrapper --------------------------------------


@functools.partial(
    jax.jit, static_argnames=("compute_dtype", "tm_max", "tn_max", "tk_max")
)
def time_distributed_linear(x, w, b, *, compute_dtype=jnp.bfloat16,
                            tm_max=512, tn_max=256, tk_max=512):
    """TimeDistributed(Linear) forward.  x: (B,T,F), w: (F,H), b: (H,) -> (B,T,H).

    compute_dtype: dtype the MXU operands are cast to (None = no cast / exact).
    """
    B, T, F = x.shape
    H = w.shape[1]
    M = B * T
    out_dtype = x.dtype

    # Flatten (B, T) -> M: adjacent leading dims, contiguous view, no copy.
    x2 = x.reshape(M, F)

    # ---- H (lane) axis: pad to a 128 multiple -> unmasked, lane-dense stores.
    H_pad = _round_up(H, 128)
    tn = _pick_tile(H_pad, tn_max)
    n_n = H_pad // tn

    # ---- K axis: full extent when small (weight K-resident); otherwise round
    # F to 128 (not tk_max) and stream K in 128-multiple tiles.
    if F <= tk_max:
        tk, F_pad = F, F
    else:
        F_pad = _round_up(F, 128)
        tk = _pick_tile(F_pad, tk_max)
    n_k = F_pad // tk

    # K padding must be explicit zeros for correctness (padded products = 0).
    if F_pad != F:
        x2 = jnp.pad(x2, ((0, 0), (0, F_pad - F)))
    w_p = w
    if F_pad != F or H_pad != H:
        w_p = jnp.pad(w, ((0, F_pad - F), (0, H_pad - H)))
    b_p = b if H_pad == H else jnp.pad(b, (0, H_pad - H))
    b2 = b_p.reshape(1, H_pad).astype(jnp.float32)

    if compute_dtype is not None:
        w_p = w_p.astype(compute_dtype)      # cast once; streamed many times

    # ---- M axis: NO wrapper padding; Pallas masks the partial edge block.
    sub = _sublane(x2.dtype)
    tm = min(tm_max, _round_up(M, sub))
    n_m = pl.cdiv(M, tm)
    if n_m == 1 and M > sub:
        # Ensure >= 2 M tiles so v7x's second TensorCore gets work.
        tm = _round_up(pl.cdiv(M, 2), sub)
        n_m = pl.cdiv(M, tm)

    # ---- VMEM budget from the chosen tiles (double-buffered) + headroom.
    xb = jnp.dtype(x2.dtype).itemsize
    wb = jnp.dtype(w_p.dtype).itemsize
    ob = jnp.dtype(out_dtype).itemsize
    vmem_est = (2 * tm * max(tk, 128) * xb          # activation tiles
                + 2 * max(tk, 8) * tn * wb          # weight tiles
                + 2 * tm * tn * ob                  # output tiles
                + 2 * tn * 4                        # bias tiles
                + tm * tn * 4)                      # f32 accumulator
    vmem_limit = int(min(48 << 20, max(16 << 20, 2 * vmem_est)))

    if n_k == 1:
        kernel = functools.partial(_td_linear_kernel_resident_k,
                                   compute_dtype=compute_dtype)
        out = pl.pallas_call(
            kernel,
            out_shape=jax.ShapeDtypeStruct((M, H_pad), out_dtype),
            grid_spec=pltpu.PrefetchScalarGridSpec(
                num_scalar_prefetch=0,
                grid=(n_m, n_n),
                in_specs=[
                    pl.BlockSpec((tm, F_pad), lambda i, j: (i, 0)),   # x
                    pl.BlockSpec((F_pad, tn), lambda i, j: (0, j)),   # w
                    pl.BlockSpec((1, tn), lambda i, j: (0, j)),       # bias
                ],
                out_specs=pl.BlockSpec((tm, tn), lambda i, j: (i, j)),
            ),
            compiler_params=pltpu.CompilerParams(
                dimension_semantics=("parallel", "parallel"),
                vmem_limit_bytes=vmem_limit,
            ),
        )(x2, w_p, b2)
    else:
        kernel = functools.partial(_td_linear_kernel_streamed_k,
                                   compute_dtype=compute_dtype)
        out = pl.pallas_call(
            kernel,
            out_shape=jax.ShapeDtypeStruct((M, H_pad), out_dtype),
            grid_spec=pltpu.PrefetchScalarGridSpec(
                num_scalar_prefetch=0,
                grid=(n_m, n_n, n_k),
                in_specs=[
                    pl.BlockSpec((tm, tk), lambda i, j, k: (i, k)),   # x
                    pl.BlockSpec((tk, tn), lambda i, j, k: (k, j)),   # w
                    pl.BlockSpec((1, tn), lambda i, j, k: (0, j)),    # bias
                ],
                out_specs=pl.BlockSpec((tm, tn), lambda i, j, k: (i, j)),
                scratch_shapes=[pltpu.VMEM((tm, tn), jnp.float32)],
            ),
            compiler_params=pltpu.CompilerParams(
                dimension_semantics=("parallel", "parallel", "arbitrary"),
                vmem_limit_bytes=vmem_limit,
            ),
        )(x2, w_p, b2)

    if H_pad != H:
        out = out[:, :H]
    return out.reshape(B, T, H)


def reference(x, w, b):
    # pure-JAX reference of the TimeDistributed(Linear) forward
    return jnp.einsum("btf,fh->bth", x, w) + b[None, None, :]


if __name__ == "__main__":
    # Small shape matching the module's per-timestep Linear usage.
    B, T, F, H = 2, 8, 32, 32

    key = jax.random.PRNGKey(0)
    kx, kw, kb = jax.random.split(key, 3)
    x = jax.random.normal(kx, (B, T, F), dtype=jnp.float32)
    w = jax.random.normal(kw, (F, H), dtype=jnp.float32) * 0.1
    b = jax.random.normal(kb, (H,), dtype=jnp.float32) * 0.1

    ref = reference(x, w, b)

    # Exact f32 path (single-K-step kernel, H padded to 128, 2 M tiles).
    out_f32 = jax.block_until_ready(
        time_distributed_linear(x, w, b, compute_dtype=None))
    assert out_f32.shape == (B, T, H)
    assert jnp.allclose(out_f32, ref, atol=1e-5, rtol=1e-5)

    # Default bf16-MXU path (f32 accumulation) — looser numerical tolerance.
    out_bf16 = jax.block_until_ready(time_distributed_linear(x, w, b))
    assert out_bf16.shape == (B, T, H)
    assert jnp.allclose(out_bf16, ref, atol=2e-2, rtol=2e-2)

    # Larger shape exercising K streaming, H tiling and the masked partial
    # M edge block (no wrapper-side M padding).
    B2, T2, F2, H2 = 3, 37, 640, 384
    x2 = jax.random.normal(kx, (B2, T2, F2), dtype=jnp.float32)
    w2 = jax.random.normal(kw, (F2, H2), dtype=jnp.float32) * 0.05
    b2 = jax.random.normal(kb, (H2,), dtype=jnp.float32) * 0.05
    out2 = jax.block_until_ready(
        time_distributed_linear(x2, w2, b2, compute_dtype=None, tk_max=256))
    ref2 = reference(x2, w2, b2)
    assert out2.shape == (B2, T2, H2)
    assert jnp.allclose(out2, ref2, atol=2e-2, rtol=2e-2)

    print("KERNEL_OK")
</pallas_src>

<mosaic_0001>
module attributes {stable_mosaic.version = 11 : i64} {
  func.func @_td_linear_kernel_resident_k(%arg0: i32, %arg1: i32, %arg2: memref<8x32xf32, #tpu.memory_space<vmem>>, %arg3: memref<32x128xf32, #tpu.memory_space<vmem>>, %arg4: memref<1x128xf32, #tpu.memory_space<vmem>>, %arg5: memref<8x128xf32, #tpu.memory_space<vmem>>) attributes {dimension_semantics = [#tpu.dimension_semantics<parallel>, #tpu.dimension_semantics<parallel>], iteration_bounds = array<i64: 2, 1>, scalar_prefetch = 0 : i64, scratch_operands = 0 : i64, tpu.core_type = #tpu.core_type<tc>, window_params = [{transform_indices = @transform_0, window_bounds = array<i64: 8, 32>}, {transform_indices = @transform_1, window_bounds = array<i64: 32, 128>}, {transform_indices = @transform_2, window_bounds = array<i64: 1, 128>}, {transform_indices = @transform_3, window_bounds = array<i64: 8, 128>}]} {
    %c0 = arith.constant 0 : index
    %c0_0 = arith.constant 0 : index
    %0 = vector.load %arg2[%c0, %c0_0] : memref<8x32xf32, #tpu.memory_space<vmem>>, vector<8x32xf32>
    %c0_1 = arith.constant 0 : index
    %c0_2 = arith.constant 0 : index
    %1 = vector.load %arg3[%c0_1, %c0_2] : memref<32x128xf32, #tpu.memory_space<vmem>>, vector<32x128xf32>
    %cst = arith.constant dense<0.000000e+00> : vector<8x128xf32>
    %2 = tpu.matmul %0, %1, %cst {dimension_numbers = #tpu.dot_dimension_numbers<[1], [0], [0], [1], [0, 0, 1, 1], [], []>} : vector<8x32xf32>, vector<32x128xf32>, vector<8x128xf32> -> vector<8x128xf32>
    %c0_3 = arith.constant 0 : index
    %c0_4 = arith.constant 0 : index
    %3 = vector.load %arg4[%c0_3, %c0_4] : memref<1x128xf32, #tpu.memory_space<vmem>>, vector<1x128xf32>
    %4 = vector.broadcast %3 : vector<1x128xf32> to vector<8x128xf32>
    %5 = arith.addf %2, %4 : vector<8x128xf32>
    %c0_5 = arith.constant 0 : index
    %c0_6 = arith.constant 0 : index
    %6 = vector.load %arg5[%c0_5, %c0_6] : memref<8x128xf32, #tpu.memory_space<vmem>>, vector<8x128xf32>
    tpu.vector_store %arg5[%c0_5, %c0_6], %5 {strides = array<i32>} : memref<8x128xf32, #tpu.memory_space<vmem>>, vector<8x128xf32>,
    return
  }
  func.func @transform_0(%arg0: i32, %arg1: i32) -> (i32, i32) {
    %c0_i32 = arith.constant 0 : i32
    %c0_i32_0 = arith.constant 0 : i32
    return %arg0, %c0_i32 : i32, i32
  }
  func.func @transform_1(%arg0: i32, %arg1: i32) -> (i32, i32) {
    %c0_i32 = arith.constant 0 : i32
    %c0_i32_0 = arith.constant 0 : i32
    return %c0_i32, %arg1 : i32, i32
  }
  func.func @transform_2(%arg0: i32, %arg1: i32) -> (i32, i32) {
    %c0_i32 = arith.constant 0 : i32
    %c0_i32_0 = arith.constant 0 : i32
    return %c0_i32, %arg1 : i32, i32
  }
  func.func @transform_3(%arg0: i32, %arg1: i32) -> (i32, i32) {
    %c0_i32 = arith.constant 0 : i32
    return %arg0, %arg1 : i32, i32
  }
}

</mosaic_0001>

<bundles_post_ra>
// kernel: time_distributed_linear.1
= control target key start
LH: loop header
LB: loop body
LE: loop exit
PB: predicated region body
PF: predicated region fallthrough
CT: control target
= control target key end

     0   :  { %s512_s12 = smov 0   ;;  %s514_s13 = smov 0   ;;  %s560_s0 = inlined_call_operand.vmem [shape: f32[16,32], index: 0, kind: input, shape index: {}]   ;;  %s561_s1 = inlined_call_operand.vmem [shape: f32[32,128], index: 1, kind: input, shape index: {}]   ;;  %s562_s2 = inlined_call_operand.vmem [shape: f32[1,128], index: 2, kind: input, shape index: {}]   ;;  %s563_s3 = inlined_call_operand.vmem [shape: f32[16,128], index: 3, kind: output, shape index: {}]  }
   0x1   :  { %s516_s14 = smov 0  }
   0x2 LB: > { %s25_s15 = sadd.s32 1, %s483_s13  ;;  %p409_p0 = scmp.ge.s32.totalorder %s487_s14, 1  ;;  %s487_s14 = sphi %s516_s14, %s13_s14   ;;  %s483_s13 = sphi %s514_s13, %s565_s13   ;;  %s479_s12 = sphi %s512_s12, %s564_s12  }
   0x3   : > { %p27_p1 = scmp.ge.s32.totalorder %s25_s15, 2  ;;  %p167_p2 = scmp.lt.s32.totalorder %s487_s14, 3 }
   0x5   : > { %s567_s15 = smov (%p27_p1, %s25_s15), 0  ;;  %p168_p3 = pnand %p409_p0, %p167_p2 }
   0x6   : > { %v218_v0 = vld [vmem:[%s561_s1] sm:$0xff] (!%p168_p3)  ;;  %v219_v1 = vld [vmem:[%s561_s1 + $0x8] sm:$0xff] (!%p168_p3)  ;;  %v220_v2 = vld [vmem:[%s561_s1 + $0x10] sm:$0xff] (!%p168_p3)  ;;  %v489_v3 = vmov (!%p168_p3), 0.0|0.0   ;;  %vm490_vm0 = vmmov (!%p168_p3), 0   ;;  %v491_v6 = vmov (!%p168_p3), 0.0  }
   0x7   : > { %171 = sbr.rel (%p168_p3) target bundleno = 233 (0xe9), region = 32  ;;  %432 = vmatprep.subr.bf16.mxu0 (!%p168_p3), %v489_v3  ;;  %v433_v4 = vpack.c.bf16 (!%p168_p3), %v219_v1, %v218_v0  ;;  %v221_v5 = vld [vmem:[%s561_s1 + $0x18] sm:$0xff] (!%p168_p3)  ;;  %429 = vmatprep.mubr.msk.f32.mxu0 (!%p168_p3), %vm490_vm0, %v491_v6  ;;  %p199_p4 = scmp.lt.s32.totalorder (!%p168_p3), %s479_s12, 1  ;;  %vm229_vm1 = vcmask (!%p168_p3), 261120   ;;  %v412_v9 = vld [vmem:[%s562_s2] ss:$0 sm:$0xff] (!%p168_p3) }
   0x8   : > { %v436_v7 = vpack.c.bf16 (!%p168_p3), %v221_v5, %v220_v2 }
   0x9   : > { %434 = vmatpush3.bf16.msra.mxu0 (!%p168_p3), %v433_v4 }
   0xa   : > { %435 = vmatprep.subr.bf16.mxu0 (!%p168_p3), %v489_v3 }
   0xd   : > { %437 = vmatpush3.bf16.msra.mxu0 (!%p168_p3), %v436_v7 }
   0xe   : > { %s569_s12 = smov (!%p199_p4, %s479_s12), 1 }
   0xf   : > { %s410_s24 = sshll.u32 %s569_s12, 3 }
  0x10   : > { %s202_s27 = scalar_lea.vmem %s560_s0, %s410_s24  ;;  %s216_s5 = scalar_lea.vmem %s563_s3, %s410_s24 }
  0x11   : > { %v217_v8 = vld [vmem:[%s202_s27] sm:$0xff] }
  0x12   : > { %430 = vmatmul.mubr.msk.f32.vlgmr.msra.gmra.mrb[0].mxu0 %vm229_vm1, %v217_v8 }
  0xe5   : > { %v299_v10 = vpop.f32.mrb[0].mxu0 }
  0xe6   : > { %v300_v11 = vadd.f32 %v412_v9, %v299_v10  ;;  %v431_v12 = vpop.f32.mrb[1].mxu0 }
  0xe8   : > { %303 = vst [vmem:[%s216_s5] sm:$0xff] %v300_v11 }
  0xe9 PF: > { %s13_s14 = sadd.s32 1, %s487_s14   ;;  %s564_s12 = smov %s483_s13 }
  0xea   : > { %p10_p5 = scmp.ge.s32.totalorder %s13_s14, 4   ;;  %s565_s13 = smov %s567_s15 }
  0xec   :  { %12 = sbr.rel (!%p10_p5) target bundleno = 2 (0x2), region = 68 }

</bundles_post_ra>
